<compile_context>
chip_gen: v5e
topology: v5e:2x2
jax: 0.10.0
libtpu: 0.0.40
codegen_flags: <defaults>
</compile_context>

<pallas_src>
import jax
import jax.numpy as jnp
from jax.experimental import pallas as pl
from jax.experimental.pallas import tpu as pltpu

# ---- model hyperparameters (from the PyTorch script) ----
MF_BIT = 4
N_INPUT = MF_BIT + 1     # 5
N_HIDDEN = 10
N_LAYER = 2              # -> one hidden Linear(10,10)+Dropout+ReLU block
N_OUTPUT = 1
DROPOUT_RATE = 0.2       # identity at inference

# ---- padded tile sizes (feature-major layout: [features/hidden, batch]) ----
LANE = 128               # batch tile granularity (lane axis)
SUB = 8                  # sublane granularity
IN_PAD = 8               # input features padded 5 -> 8 sublanes
H_PAD = 16               # hidden units padded 10 -> 16 sublanes
TILE_B_MAX = 8192        # batch tile: x tile = 8*8192*4 B = 256 KiB, out = 32 KiB


def _round_up(n, m):
    return ((n + m - 1) // m) * m


def _pad2(a, rows, cols):
    a = jnp.asarray(a, jnp.float32)
    r, c = a.shape
    return jnp.pad(a, ((0, rows - r), (0, cols - c)))


def mlp_kernel(x_ref, w1_ref, b1_ref, w2_ref, b2_ref, w3_ref, b3_ref, o_ref):
    x = x_ref[...]                                   # (IN_PAD, TB): features on sublanes, batch on lanes

    # fcs: Linear(5 -> 10) + ReLU.  5-wide contraction as broadcast VPU MACs:
    # (H_PAD, 1) weight column * (1, TB) feature row.
    h = b1_ref[...]                                  # (H_PAD, 1) -> broadcasts across lanes
    for f in range(N_INPUT):
        h = h + w1_ref[:, f:f + 1] * x[f:f + 1, :]
    h = jnp.maximum(h, 0.0)                          # (H_PAD, TB)

    # fch: Linear(10 -> 10) + Dropout (identity at eval) + ReLU.
    h2 = b2_ref[...]                                 # (H_PAD, 1)
    for j in range(N_HIDDEN):
        h2 = h2 + w2_ref[:, j:j + 1] * h[j:j + 1, :]
    h2 = jnp.maximum(h2, 0.0)                        # (H_PAD, TB)

    # fce: Linear(10 -> 1): weighted cross-sublane (XLU) reduction + scalar bias.
    out = jnp.sum(h2 * w3_ref[...], axis=0, keepdims=True)   # (1, TB)
    o_ref[...] = out + b3_ref[...]                   # lane-dense store


def psat_dl_forward(x, params, tile_b=TILE_B_MAX):
    """x: [B, N_INPUT].  params store W as [in, out] (transposed vs torch)."""
    B = x.shape[0]
    tb = _round_up(min(tile_b, _round_up(B, LANE)), LANE)
    Bp = _round_up(B, tb)

    # Feature-major input: (IN_PAD, Bp) -- 32 B/row of HBM read, batch on lanes.
    x_t = _pad2(jnp.asarray(x, jnp.float32).T, IN_PAD, Bp)

    w1 = _pad2(params["w1"].T, H_PAD, IN_PAD)        # (16, 8)   [out, in]
    b1 = _pad2(params["b1"][:, None], H_PAD, 1)      # (16, 1)
    w2 = _pad2(params["w2"].T, H_PAD, H_PAD)         # (16, 16)  [out, in]
    b2 = _pad2(params["b2"][:, None], H_PAD, 1)      # (16, 1)
    w3 = _pad2(params["w3"], H_PAD, 1)               # (16, 1)   output-weight column
    b3 = _pad2(params["b3"][None, :], 1, 1)          # (1, 1)

    def resident(shape):
        return pl.BlockSpec(shape, lambda i: (0, 0))   # stays VMEM-resident across the grid

    out = pl.pallas_call(
        mlp_kernel,
        out_shape=jax.ShapeDtypeStruct((1, Bp), jnp.float32),
        grid=(Bp // tb,),
        in_specs=[
            pl.BlockSpec((IN_PAD, tb), lambda i: (0, i)),   # x: streamed per batch tile
            resident((H_PAD, IN_PAD)),                      # w1
            resident((H_PAD, 1)),                           # b1
            resident((H_PAD, H_PAD)),                       # w2
            resident((H_PAD, 1)),                           # b2
            resident((H_PAD, 1)),                           # w3
            resident((1, 1)),                               # b3
        ],
        out_specs=pl.BlockSpec((1, tb), lambda i: (0, i)),  # lane-dense writeback
        compiler_params=pltpu.CompilerParams(
            dimension_semantics=("parallel",)),             # v7x: shard batch over 2 TCs
    )(x_t, w1, b1, w2, b2, w3, b3)

    return out[0, :B].reshape(B, N_OUTPUT)


def init_params(key):
    """Deterministic init mimicking torch.nn.Linear (U[-1/sqrt(fan_in), +])."""
    ks = jax.random.split(key, 6)

    def lin(kw, kb, fan_in, fan_out):
        bound = 1.0 / jnp.sqrt(jnp.float32(fan_in))
        w = jax.random.uniform(kw, (fan_in, fan_out), jnp.float32, -bound, bound)
        b = jax.random.uniform(kb, (fan_out,), jnp.float32, -bound, bound)
        return w, b

    w1, b1 = lin(ks[0], ks[1], N_INPUT, N_HIDDEN)
    w2, b2 = lin(ks[2], ks[3], N_HIDDEN, N_HIDDEN)
    w3, b3 = lin(ks[4], ks[5], N_HIDDEN, N_OUTPUT)
    return {"w1": w1, "b1": b1, "w2": w2, "b2": b2, "w3": w3, "b3": b3}


def reference_forward(x, p):
    hp = jax.lax.Precision.HIGHEST   # keep the f32 reference exact on TPU
    h = jnp.maximum(jnp.dot(x, p["w1"], precision=hp) + p["b1"], 0.0)
    h = jnp.maximum(jnp.dot(h, p["w2"], precision=hp) + p["b2"], 0.0)   # Dropout = identity at eval
    return jnp.dot(h, p["w3"], precision=hp) + p["b3"]


if __name__ == "__main__":
    key = jax.random.PRNGKey(0)
    k_param, k_x1, k_x2 = jax.random.split(key, 3)

    params = init_params(k_param)

    # small "std_x_test"-style batch (5 standardized features per row)
    B = 8
    x = jax.random.normal(k_x1, (B, N_INPUT), jnp.float32)
    pred = jax.block_until_ready(psat_dl_forward(x, params))
    ref = reference_forward(x, params)
    assert pred.shape == (B, N_OUTPUT)
    assert jnp.allclose(pred, ref, atol=1e-4, rtol=1e-4)

    # ragged batch exercising the multi-step grid + batch-padding path
    B2 = 300
    x2 = jax.random.normal(k_x2, (B2, N_INPUT), jnp.float32)
    pred2 = jax.block_until_ready(psat_dl_forward(x2, params, tile_b=128))
    ref2 = reference_forward(x2, params)
    assert pred2.shape == (B2, N_OUTPUT)
    assert jnp.allclose(pred2, ref2, atol=1e-4, rtol=1e-4)

    print("KERNEL_OK")
</pallas_src>

<mosaic_0001>
module attributes {stable_mosaic.version = 11 : i64} {
  func.func @mlp_kernel(%arg0: i32, %arg1: memref<8x128xf32, #tpu.memory_space<vmem>>, %arg2: memref<16x8xf32, #tpu.memory_space<vmem>>, %arg3: memref<16x1xf32, #tpu.memory_space<vmem>>, %arg4: memref<16x16xf32, #tpu.memory_space<vmem>>, %arg5: memref<16x1xf32, #tpu.memory_space<vmem>>, %arg6: memref<16x1xf32, #tpu.memory_space<vmem>>, %arg7: memref<1x1xf32, #tpu.memory_space<vmem>>, %arg8: memref<1x128xf32, #tpu.memory_space<vmem>>) attributes {dimension_semantics = [#tpu.dimension_semantics<parallel>], iteration_bounds = array<i64: 1>, scalar_prefetch = 0 : i64, scratch_operands = 0 : i64, tpu.core_type = #tpu.core_type<tc>, window_params = [{transform_indices = @transform_0, window_bounds = array<i64: 8, 128>}, {pipeline_mode = #tpu.pipeline_mode<synchronous>, transform_indices = @transform_1, window_bounds = array<i64: 16, 8>}, {pipeline_mode = #tpu.pipeline_mode<synchronous>, transform_indices = @transform_2, window_bounds = array<i64: 16, 1>}, {pipeline_mode = #tpu.pipeline_mode<synchronous>, transform_indices = @transform_3, window_bounds = array<i64: 16, 16>}, {pipeline_mode = #tpu.pipeline_mode<synchronous>, transform_indices = @transform_4, window_bounds = array<i64: 16, 1>}, {pipeline_mode = #tpu.pipeline_mode<synchronous>, transform_indices = @transform_5, window_bounds = array<i64: 16, 1>}, {pipeline_mode = #tpu.pipeline_mode<synchronous>, transform_indices = @transform_6, window_bounds = array<i64: 1, 1>}, {transform_indices = @transform_7, window_bounds = array<i64: 1, 128>}]} {
    %c0 = arith.constant 0 : index
    %c0_0 = arith.constant 0 : index
    %0 = vector.load %arg1[%c0, %c0_0] : memref<8x128xf32, #tpu.memory_space<vmem>>, vector<8x128xf32>
    %c0_1 = arith.constant 0 : index
    %c0_2 = arith.constant 0 : index
    %1 = vector.load %arg3[%c0_1, %c0_2] : memref<16x1xf32, #tpu.memory_space<vmem>>, vector<16x1xf32>
    %c0_3 = arith.constant 0 : index
    %c0_4 = arith.constant 0 : index
    %2 = vector.load %arg2[%c0_3, %c0_4] : memref<16x8xf32, #tpu.memory_space<vmem>>, vector<16x1xf32>
    %3 = vector.extract_strided_slice %0 {offsets = [0, 0], sizes = [1, 128], strides = [1, 1]} : vector<8x128xf32> to vector<1x128xf32>
    %4 = vector.broadcast %2 : vector<16x1xf32> to vector<16x128xf32>
    %5 = vector.broadcast %3 : vector<1x128xf32> to vector<16x128xf32>
    %6 = arith.mulf %4, %5 : vector<16x128xf32>
    %7 = vector.broadcast %1 : vector<16x1xf32> to vector<16x128xf32>
    %8 = arith.addf %7, %6 : vector<16x128xf32>
    %c0_5 = arith.constant 0 : index
    %c1 = arith.constant 1 : index
    %9 = vector.load %arg2[%c0_5, %c1] : memref<16x8xf32, #tpu.memory_space<vmem>>, vector<16x1xf32>
    %10 = vector.extract_strided_slice %0 {offsets = [1, 0], sizes = [1, 128], strides = [1, 1]} : vector<8x128xf32> to vector<1x128xf32>
    %11 = vector.broadcast %9 : vector<16x1xf32> to vector<16x128xf32>
    %12 = vector.broadcast %10 : vector<1x128xf32> to vector<16x128xf32>
    %13 = arith.mulf %11, %12 : vector<16x128xf32>
    %14 = arith.addf %8, %13 : vector<16x128xf32>
    %c0_6 = arith.constant 0 : index
    %c2 = arith.constant 2 : index
    %15 = vector.load %arg2[%c0_6, %c2] : memref<16x8xf32, #tpu.memory_space<vmem>>, vector<16x1xf32>
    %16 = vector.extract_strided_slice %0 {offsets = [2, 0], sizes = [1, 128], strides = [1, 1]} : vector<8x128xf32> to vector<1x128xf32>
    %17 = vector.broadcast %15 : vector<16x1xf32> to vector<16x128xf32>
    %18 = vector.broadcast %16 : vector<1x128xf32> to vector<16x128xf32>
    %19 = arith.mulf %17, %18 : vector<16x128xf32>
    %20 = arith.addf %14, %19 : vector<16x128xf32>
    %c0_7 = arith.constant 0 : index
    %c3 = arith.constant 3 : index
    %21 = vector.load %arg2[%c0_7, %c3] : memref<16x8xf32, #tpu.memory_space<vmem>>, vector<16x1xf32>
    %22 = vector.extract_strided_slice %0 {offsets = [3, 0], sizes = [1, 128], strides = [1, 1]} : vector<8x128xf32> to vector<1x128xf32>
    %23 = vector.broadcast %21 : vector<16x1xf32> to vector<16x128xf32>
    %24 = vector.broadcast %22 : vector<1x128xf32> to vector<16x128xf32>
    %25 = arith.mulf %23, %24 : vector<16x128xf32>
    %26 = arith.addf %20, %25 : vector<16x128xf32>
    %c0_8 = arith.constant 0 : index
    %c4 = arith.constant 4 : index
    %27 = vector.load %arg2[%c0_8, %c4] : memref<16x8xf32, #tpu.memory_space<vmem>>, vector<16x1xf32>
    %28 = vector.extract_strided_slice %0 {offsets = [4, 0], sizes = [1, 128], strides = [1, 1]} : vector<8x128xf32> to vector<1x128xf32>
    %29 = vector.broadcast %27 : vector<16x1xf32> to vector<16x128xf32>
    %30 = vector.broadcast %28 : vector<1x128xf32> to vector<16x128xf32>
    %31 = arith.mulf %29, %30 : vector<16x128xf32>
    %32 = arith.addf %26, %31 : vector<16x128xf32>
    %cst = arith.constant 0.000000e+00 : f32
    %33 = vector.broadcast %cst : f32 to vector<16x128xf32>
    %34 = arith.maximumf %32, %33 : vector<16x128xf32>
    %c0_9 = arith.constant 0 : index
    %c0_10 = arith.constant 0 : index
    %35 = vector.load %arg5[%c0_9, %c0_10] : memref<16x1xf32, #tpu.memory_space<vmem>>, vector<16x1xf32>
    %c0_11 = arith.constant 0 : index
    %c0_12 = arith.constant 0 : index
    %36 = vector.load %arg4[%c0_11, %c0_12] : memref<16x16xf32, #tpu.memory_space<vmem>>, vector<16x1xf32>
    %37 = vector.extract_strided_slice %34 {offsets = [0, 0], sizes = [1, 128], strides = [1, 1]} : vector<16x128xf32> to vector<1x128xf32>
    %38 = vector.broadcast %36 : vector<16x1xf32> to vector<16x128xf32>
    %39 = vector.broadcast %37 : vector<1x128xf32> to vector<16x128xf32>
    %40 = arith.mulf %38, %39 : vector<16x128xf32>
    %41 = vector.broadcast %35 : vector<16x1xf32> to vector<16x128xf32>
    %42 = arith.addf %41, %40 : vector<16x128xf32>
    %c0_13 = arith.constant 0 : index
    %c1_14 = arith.constant 1 : index
    %43 = vector.load %arg4[%c0_13, %c1_14] : memref<16x16xf32, #tpu.memory_space<vmem>>, vector<16x1xf32>
    %44 = vector.extract_strided_slice %34 {offsets = [1, 0], sizes = [1, 128], strides = [1, 1]} : vector<16x128xf32> to vector<1x128xf32>
    %45 = vector.broadcast %43 : vector<16x1xf32> to vector<16x128xf32>
    %46 = vector.broadcast %44 : vector<1x128xf32> to vector<16x128xf32>
    %47 = arith.mulf %45, %46 : vector<16x128xf32>
    %48 = arith.addf %42, %47 : vector<16x128xf32>
    %c0_15 = arith.constant 0 : index
    %c2_16 = arith.constant 2 : index
    %49 = vector.load %arg4[%c0_15, %c2_16] : memref<16x16xf32, #tpu.memory_space<vmem>>, vector<16x1xf32>
    %50 = vector.extract_strided_slice %34 {offsets = [2, 0], sizes = [1, 128], strides = [1, 1]} : vector<16x128xf32> to vector<1x128xf32>
    %51 = vector.broadcast %49 : vector<16x1xf32> to vector<16x128xf32>
    %52 = vector.broadcast %50 : vector<1x128xf32> to vector<16x128xf32>
    %53 = arith.mulf %51, %52 : vector<16x128xf32>
    %54 = arith.addf %48, %53 : vector<16x128xf32>
    %c0_17 = arith.constant 0 : index
    %c3_18 = arith.constant 3 : index
    %55 = vector.load %arg4[%c0_17, %c3_18] : memref<16x16xf32, #tpu.memory_space<vmem>>, vector<16x1xf32>
    %56 = vector.extract_strided_slice %34 {offsets = [3, 0], sizes = [1, 128], strides = [1, 1]} : vector<16x128xf32> to vector<1x128xf32>
    %57 = vector.broadcast %55 : vector<16x1xf32> to vector<16x128xf32>
    %58 = vector.broadcast %56 : vector<1x128xf32> to vector<16x128xf32>
    %59 = arith.mulf %57, %58 : vector<16x128xf32>
    %60 = arith.addf %54, %59 : vector<16x128xf32>
    %c0_19 = arith.constant 0 : index
    %c4_20 = arith.constant 4 : index
    %61 = vector.load %arg4[%c0_19, %c4_20] : memref<16x16xf32, #tpu.memory_space<vmem>>, vector<16x1xf32>
    %62 = vector.extract_strided_slice %34 {offsets = [4, 0], sizes = [1, 128], strides = [1, 1]} : vector<16x128xf32> to vector<1x128xf32>
    %63 = vector.broadcast %61 : vector<16x1xf32> to vector<16x128xf32>
    %64 = vector.broadcast %62 : vector<1x128xf32> to vector<16x128xf32>
    %65 = arith.mulf %63, %64 : vector<16x128xf32>
    %66 = arith.addf %60, %65 : vector<16x128xf32>
    %c0_21 = arith.constant 0 : index
    %c5 = arith.constant 5 : index
    %67 = vector.load %arg4[%c0_21, %c5] : memref<16x16xf32, #tpu.memory_space<vmem>>, vector<16x1xf32>
    %68 = vector.extract_strided_slice %34 {offsets = [5, 0], sizes = [1, 128], strides = [1, 1]} : vector<16x128xf32> to vector<1x128xf32>
    %69 = vector.broadcast %67 : vector<16x1xf32> to vector<16x128xf32>
    %70 = vector.broadcast %68 : vector<1x128xf32> to vector<16x128xf32>
    %71 = arith.mulf %69, %70 : vector<16x128xf32>
    %72 = arith.addf %66, %71 : vector<16x128xf32>
    %c0_22 = arith.constant 0 : index
    %c6 = arith.constant 6 : index
    %73 = vector.load %arg4[%c0_22, %c6] : memref<16x16xf32, #tpu.memory_space<vmem>>, vector<16x1xf32>
    %74 = vector.extract_strided_slice %34 {offsets = [6, 0], sizes = [1, 128], strides = [1, 1]} : vector<16x128xf32> to vector<1x128xf32>
    %75 = vector.broadcast %73 : vector<16x1xf32> to vector<16x128xf32>
    %76 = vector.broadcast %74 : vector<1x128xf32> to vector<16x128xf32>
    %77 = arith.mulf %75, %76 : vector<16x128xf32>
    %78 = arith.addf %72, %77 : vector<16x128xf32>
    %c0_23 = arith.constant 0 : index
    %c7 = arith.constant 7 : index
    %79 = vector.load %arg4[%c0_23, %c7] : memref<16x16xf32, #tpu.memory_space<vmem>>, vector<16x1xf32>
    %80 = vector.extract_strided_slice %34 {offsets = [7, 0], sizes = [1, 128], strides = [1, 1]} : vector<16x128xf32> to vector<1x128xf32>
    %81 = vector.broadcast %79 : vector<16x1xf32> to vector<16x128xf32>
    %82 = vector.broadcast %80 : vector<1x128xf32> to vector<16x128xf32>
    %83 = arith.mulf %81, %82 : vector<16x128xf32>
    %84 = arith.addf %78, %83 : vector<16x128xf32>
    %c0_24 = arith.constant 0 : index
    %c8 = arith.constant 8 : index
    %85 = vector.load %arg4[%c0_24, %c8] : memref<16x16xf32, #tpu.memory_space<vmem>>, vector<16x1xf32>
    %86 = vector.extract_strided_slice %34 {offsets = [8, 0], sizes = [1, 128], strides = [1, 1]} : vector<16x128xf32> to vector<1x128xf32>
    %87 = vector.broadcast %85 : vector<16x1xf32> to vector<16x128xf32>
    %88 = vector.broadcast %86 : vector<1x128xf32> to vector<16x128xf32>
    %89 = arith.mulf %87, %88 : vector<16x128xf32>
    %90 = arith.addf %84, %89 : vector<16x128xf32>
    %c0_25 = arith.constant 0 : index
    %c9 = arith.constant 9 : index
    %91 = vector.load %arg4[%c0_25, %c9] : memref<16x16xf32, #tpu.memory_space<vmem>>, vector<16x1xf32>
    %92 = vector.extract_strided_slice %34 {offsets = [9, 0], sizes = [1, 128], strides = [1, 1]} : vector<16x128xf32> to vector<1x128xf32>
    %93 = vector.broadcast %91 : vector<16x1xf32> to vector<16x128xf32>
    %94 = vector.broadcast %92 : vector<1x128xf32> to vector<16x128xf32>
    %95 = arith.mulf %93, %94 : vector<16x128xf32>
    %96 = arith.addf %90, %95 : vector<16x128xf32>
    %cst_26 = arith.constant 0.000000e+00 : f32
    %97 = vector.broadcast %cst_26 : f32 to vector<16x128xf32>
    %98 = arith.maximumf %96, %97 : vector<16x128xf32>
    %c0_27 = arith.constant 0 : index
    %c0_28 = arith.constant 0 : index
    %99 = vector.load %arg6[%c0_27, %c0_28] : memref<16x1xf32, #tpu.memory_space<vmem>>, vector<16x1xf32>
    %100 = vector.broadcast %99 : vector<16x1xf32> to vector<16x128xf32>
    %101 = arith.mulf %98, %100 : vector<16x128xf32>
    %cst_29 = arith.constant dense<0.000000e+00> : vector<128xf32>
    %102 = vector.multi_reduction <add>, %101, %cst_29 [0] : vector<16x128xf32> to vector<128xf32>
    %103 = vector.shape_cast %102 : vector<128xf32> to vector<1x128xf32>
    %c0_30 = arith.constant 0 : index
    %c0_31 = arith.constant 0 : index
    %104 = vector.load %arg7[%c0_30, %c0_31] : memref<1x1xf32, #tpu.memory_space<vmem>>, vector<1x1xf32>
    %105 = vector.broadcast %104 : vector<1x1xf32> to vector<1x128xf32>
    %106 = arith.addf %103, %105 : vector<1x128xf32>
    %c0_32 = arith.constant 0 : index
    %c0_33 = arith.constant 0 : index
    %107 = vector.load %arg8[%c0_32, %c0_33] : memref<1x128xf32, #tpu.memory_space<vmem>>, vector<1x128xf32>
    tpu.vector_store %arg8[%c0_32, %c0_33], %106 {strides = array<i32>} : memref<1x128xf32, #tpu.memory_space<vmem>>, vector<1x128xf32>,
    return
  }
  func.func @transform_0(%arg0: i32) -> (i32, i32) {
    %c0_i32 = arith.constant 0 : i32
    %c0_i32_0 = arith.constant 0 : i32
    return %c0_i32, %arg0 : i32, i32
  }
  func.func @transform_1(%arg0: i32) -> (i32, i32) {
    %c0_i32 = arith.constant 0 : i32
    %c0_i32_0 = arith.constant 0 : i32
    %c0_i32_1 = arith.constant 0 : i32
    return %c0_i32, %c0_i32_0 : i32, i32
  }
  func.func @transform_2(%arg0: i32) -> (i32, i32) {
    %c0_i32 = arith.constant 0 : i32
    %c0_i32_0 = arith.constant 0 : i32
    %c0_i32_1 = arith.constant 0 : i32
    return %c0_i32, %c0_i32_0 : i32, i32
  }
  func.func @transform_3(%arg0: i32) -> (i32, i32) {
    %c0_i32 = arith.constant 0 : i32
    %c0_i32_0 = arith.constant 0 : i32
    %c0_i32_1 = arith.constant 0 : i32
    return %c0_i32, %c0_i32_0 : i32, i32
  }
  func.func @transform_4(%arg0: i32) -> (i32, i32) {
    %c0_i32 = arith.constant 0 : i32
    %c0_i32_0 = arith.constant 0 : i32
    %c0_i32_1 = arith.constant 0 : i32
    return %c0_i32, %c0_i32_0 : i32, i32
  }
  func.func @transform_5(%arg0: i32) -> (i32, i32) {
    %c0_i32 = arith.constant 0 : i32
    %c0_i32_0 = arith.constant 0 : i32
    %c0_i32_1 = arith.constant 0 : i32
    return %c0_i32, %c0_i32_0 : i32, i32
  }
  func.func @transform_6(%arg0: i32) -> (i32, i32) {
    %c0_i32 = arith.constant 0 : i32
    %c0_i32_0 = arith.constant 0 : i32
    %c0_i32_1 = arith.constant 0 : i32
    return %c0_i32, %c0_i32_0 : i32, i32
  }
  func.func @transform_7(%arg0: i32) -> (i32, i32) {
    %c0_i32 = arith.constant 0 : i32
    %c0_i32_0 = arith.constant 0 : i32
    return %c0_i32, %arg0 : i32, i32
  }
}

</mosaic_0001>

<bundles_post_ra>
// kernel: tpu_custom_call.1
= control target key start
LH: loop header
LB: loop body
LE: loop exit
PB: predicated region body
PF: predicated region fallthrough
CT: control target
= control target key end

     0   :  { %s480_s0 = inlined_call_operand.vmem [shape: f32[8,128], index: 0, kind: input, shape index: {}]   ;;  %s481_s1 = inlined_call_operand.vmem [shape: f32[16,8], index: 1, kind: input, shape index: {}]   ;;  %s482_s2 = inlined_call_operand.vmem [shape: f32[16,1], index: 2, kind: input, shape index: {}]   ;;  %s483_s3 = inlined_call_operand.vmem [shape: f32[16,16], index: 3, kind: input, shape index: {}]   ;;  %s484_s4 = inlined_call_operand.vmem [shape: f32[16,1], index: 4, kind: input, shape index: {}]   ;;  %s485_s5 = inlined_call_operand.vmem [shape: f32[16,1], index: 5, kind: input, shape index: {}]   ;;  %s486_s6 = inlined_call_operand.<no memory space> [shape: f32[1,1], index: 6, kind: input, shape index: {}]   ;;  %s487_s7 = inlined_call_operand.hbm [shape: f32[1,128], index: 7, kind: output, shape index: {}]  }
   0x1   :  { %v12_v0 = vstv %s486_s6 }
   0x2   :  { %13 = vst [vmem:[#allocation2] sm:$0x1] %v12_v0 }
   0x3   :  { %v32_v1 = vld [vmem:[%s481_s1] sm:$0xff]  ;;  %v376_v3 = vmov 1   ;;  %v377_v4 = vmov 0  }
   0x4   :  { %v30_v2 = vld [vmem:[%s482_s2] sm:$0xff]  ;;  %320 = vset.pattern.permute.xlu2 %v376_v3  ;;  %319 = vset.pattern.permute.xlu1 %v377_v4 }
   0x5   :  { %14 = vsyncpa [#allocation4], 0  ;;  %318 = vset.pattern.permute.xlu0 %v377_v4  ;;  %60 = vperm.xlu2 %320, %v32_v1   ;;  %v33_v5 = vld [vmem:[%s481_s1 + $0x8] sm:$0xff]  ;;  %v378_v7 = vmov 3   ;;  %v379_v8 = vmov 2   ;;  %v380_v9 = vmov 4  }
   0x6   :  { %36 = vperm.xlu0 %318, %v32_v1   ;;  %49 = vperm.xlu1 %319, %v30_v2   ;;  %v31_v6 = vld [vmem:[%s482_s2 + $0x8] sm:$0xff]  ;;  %v115_v11 = vld [vmem:[%s483_s3] sm:$0xff]  ;;  %v381_v14 = vmov 6   ;;  %v382_v15 = vmov 8   ;;  %v383_v16 = vmov 5   ;;  %v384_v17 = vmov 7  }
   0x7   :  { %v116_v10 = vld [vmem:[%s483_s3 + $0x8] sm:$0xff]  ;;  %v113_v13 = vld [vmem:[%s484_s4] sm:$0xff]  ;;  %v385_v21 = vmov 9   ;;  %s298_s22 = sshll.u32 %s487_s7, 4  ;;  %s299_s22 = int_to_ptr.hbm [resolvable:$true] %s298_s22 }
   0x8   :  { %v114_v12 = vld [vmem:[%s484_s4 + $0x8] sm:$0xff]  ;;  %v462_v22 = vld [vmem:[%s480_s0] sm:$0xff]  ;;  %s386_s0 = smov [#allocation3]  }
   0x9   :  { %v282_v19 = vld [vmem:[#allocation2] sm:$0x1]  ;;  %v44_v24 = vperm.slane %v462_v22, 0  ;;  %v67_v25 = vperm.slane %v462_v22, 1  ;;  %v262_v26 = vld [vmem:[%s485_s5 + $0x8] sm:$0xff]  ;;  %v80_v42 = vperm.slane %v462_v22, 2 }
   0xa   :  { %v261_v29 = vld [vmem:[%s485_s5] sm:$0xff]  ;;  %v93_v54 = vperm.slane %v462_v22, 3  ;;  %v106_v55 = vperm.slane %v462_v22, 4  ;;  %s296_s5 = sshll.u32 %s386_s0, 4  ;;  %s297_s5 = int_to_ptr.vmem [resolvable:$true] %s296_s5 }
   0xd   :  { %64 = vperm.xlu2 %320, %v33_v5  }
   0xe   :  { %41 = vperm.xlu0 %318, %v33_v5   ;;  %54 = vperm.xlu1 %319, %v31_v6  }
  0x15   :  { %323 = vset.pattern.permute.xlu2 %v378_v7 }
  0x16   :  { %321 = vset.pattern.permute.xlu0 %v379_v8  ;;  %322 = vset.pattern.permute.xlu1 %v379_v8 }
  0x17   :  { %86 = vperm.xlu2 %323, %v32_v1   ;;  %73 = vperm.xlu0 %321, %v32_v1  }
  0x18   :  { %77 = vperm.xlu1 %322, %v33_v5  }
  0x1f   :  { %325 = vset.pattern.permute.xlu2 %v380_v9  ;;  %326 = vset.pattern.permute.xlu0 %v380_v9 }
  0x20   :  { %324 = vset.pattern.permute.xlu1 %v378_v7  ;;  %99 = vperm.xlu2 %325, %v32_v1  }
  0x21   :  { %103 = vperm.xlu0 %326, %v33_v5   ;;  %90 = vperm.xlu1 %324, %v33_v5  }
  0x28   :  { %328 = vset.pattern.permute.xlu2 %v377_v4 }
  0x29   :  { %329 = vset.pattern.permute.xlu0 %v376_v3  ;;  %327 = vset.pattern.permute.xlu1 %v377_v4 }
  0x2a   :  { %124 = vperm.xlu2 %328, %v116_v10   ;;  %143 = vperm.xlu0 %329, %v115_v11  }
  0x2b   :  { %119 = vperm.xlu1 %327, %v115_v11  }
  0x32   :  { %137 = vperm.xlu2 %328, %v114_v12   ;;  %334 = vset.pattern.permute.xlu0 %v378_v7 }
  0x33   :  { %132 = vperm.xlu1 %327, %v113_v13   ;;  %173 = vperm.xlu0 %334, %v116_v10  }
  0x3a   :  { %331 = vset.pattern.permute.xlu2 %v379_v8 }
  0x3b   :  { %330 = vset.pattern.permute.xlu1 %v376_v3  ;;  %156 = vperm.xlu2 %331, %v115_v11  }
  0x3c   :  { %339 = vset.pattern.permute.xlu0 %v381_v14  ;;  %147 = vperm.xlu1 %330, %v116_v10  }
  0x3d   :  { %208 = vperm.xlu0 %339, %v115_v11  }
  0x43   :  { %333 = vset.pattern.permute.xlu2 %v378_v7 }
  0x44   :  { %332 = vset.pattern.permute.xlu1 %v379_v8  ;;  %169 = vperm.xlu2 %333, %v115_v11  }
  0x45   :  { %344 = vset.pattern.permute.xlu0 %v382_v15  ;;  %160 = vperm.xlu1 %332, %v116_v10  }
  0x46   :  { %238 = vperm.xlu0 %344, %v116_v10  }
  0x4c   :  { %336 = vset.pattern.permute.xlu2 %v380_v9 }
  0x4d   :  { %335 = vset.pattern.permute.xlu1 %v380_v9  ;;  %186 = vperm.xlu2 %336, %v116_v10  }
  0x4e   :  { %182 = vperm.xlu1 %335, %v115_v11   ;;  %349 = vset.pattern.permute.xlu0 %v377_v4 }
  0x4f   :  { %285 = vperm.xlu0 %349, %v282_v19  }
  0x55   :  { %338 = vset.pattern.permute.xlu2 %v383_v16 }
  0x56   :  { %337 = vset.pattern.permute.xlu1 %v383_v16  ;;  %199 = vperm.xlu2 %338, %v116_v10  }
  0x57   :  { %195 = vperm.xlu1 %337, %v115_v11  }
  0x5e   :  { %341 = vset.pattern.permute.xlu2 %v384_v17 }
  0x5f   :  { %340 = vset.pattern.permute.xlu1 %v381_v14  ;;  %221 = vperm.xlu2 %341, %v115_v11   ;;  %v61_v18 = vpop.permute.xlu2 %60 }
  0x60   :  { %212 = vperm.xlu1 %340, %v116_v10   ;;  %v68_v31 = vmul.f32 %v67_v25, %v61_v18 }
  0x67   :  { %343 = vset.pattern.permute.xlu2 %v382_v15  ;;  %v65_v20 = vpop.permute.xlu2 %64 }
  0x68   :  { %342 = vset.pattern.permute.xlu1 %v384_v17  ;;  %234 = vperm.xlu2 %343, %v115_v11   ;;  %v69_v38 = vmul.f32 %v67_v25, %v65_v20 }
  0x69   :  { %225 = vperm.xlu1 %342, %v116_v10  }
  0x70   :  { %346 = vset.pattern.permute.xlu2 %v385_v21 }
  0x71   :  { %345 = vset.pattern.permute.xlu1 %v385_v21  ;;  %251 = vperm.xlu2 %346, %v116_v10   ;;  %v87_v23 = vpop.permute.xlu2 %86 }
  0x72   :  { %247 = vperm.xlu1 %345, %v115_v11   ;;  %v94_v57 = vmul.f32 %v93_v54, %v87_v23 }
  0x78   :  { %v37_v27 = vpop.permute.xlu0 %36  ;;  %v50_v28 = vpop.permute.xlu1 %49 }
  0x79   :  { %v45_v30 = vmul.f32 %v44_v24, %v37_v27  ;;  %348 = vset.pattern.permute.xlu2 %v377_v4 }
  0x7a   :  { %347 = vset.pattern.permute.xlu1 %v377_v4  ;;  %270 = vperm.xlu2 %348, %v262_v26   ;;  %v100_v34 = vpop.permute.xlu2 %99 }
  0x7b   :  { %v57_v32 = vadd.f32 %v50_v28, %v45_v30  ;;  %265 = vperm.xlu1 %347, %v261_v29   ;;  %v107_v59 = vmul.f32 %v106_v55, %v100_v34 }
  0x7d   :  { %v70_v33 = vadd.f32 %v68_v31, %v57_v32 }
  0x80   :  { %v42_v35 = vpop.permute.xlu0 %41  ;;  %v55_v36 = vpop.permute.xlu1 %54 }
  0x81   :  { %v46_v37 = vmul.f32 %v44_v24, %v42_v35 }
  0x83   :  { %v58_v39 = vadd.f32 %v55_v36, %v46_v37 }
  0x84   :  { %v125_v41 = vpop.permute.xlu2 %124 }
  0x85   :  { %v71_v40 = vadd.f32 %v69_v38, %v58_v39 }
  0x89   :  { %v74_v50 = vpop.permute.xlu0 %73 }
  0x8a   :  { %v78_v43 = vpop.permute.xlu1 %77  ;;  %v81_v51 = vmul.f32 %v80_v42, %v74_v50 }
  0x8b   :  { %v82_v44 = vmul.f32 %v80_v42, %v78_v43 }
  0x8c   :  { %v138_v46 = vpop.permute.xlu2 %137  ;;  %v83_v56 = vadd.f32 %v81_v51, %v70_v33 }
  0x8d   :  { %v84_v45 = vadd.f32 %v82_v44, %v71_v40 }
  0x8e   :  { %v96_v60 = vadd.f32 %v94_v57, %v83_v56 }
  0x90   :  { %v109_v63 = vadd.f32 %v107_v59, %v96_v60 }
  0x92   :  { %v111_v0 = vmax.f32 %v109_v63, 0.0 }
  0x93   :  { %v91_v47 = vpop.permute.xlu1 %90  ;;  %v104_v58 = vpop.permute.xlu0 %103 }
  0x94   :  { %v127_v3 = vperm.slane %v111_v0, 0  ;;  %v150_v6 = vperm.slane %v111_v0, 1  ;;  %v95_v8 = vmul.f32 %v93_v54, %v91_v47  ;;  %v163_v9 = vperm.slane %v111_v0, 2 }
  0x95   :  { %v157_v48 = vpop.permute.xlu2 %156  ;;  %v108_v15 = vmul.f32 %v106_v55, %v104_v58  ;;  %v176_v18 = vperm.slane %v111_v0, 3  ;;  %v189_v20 = vperm.slane %v111_v0, 4  ;;  %v202_v26 = vperm.slane %v111_v0, 5 }
  0x96   :  { %v97_v14 = vadd.f32 %v95_v8, %v84_v45  ;;  %v164_v16 = vmul.f32 %v163_v9, %v157_v48  ;;  %v129_v21 = vmul.f32 %v127_v3, %v125_v41  ;;  %v215_v30 = vperm.slane %v111_v0, 6 }
  0x97   :  { %v228_v38 = vperm.slane %v111_v0, 7 }
  0x98   :  { %v110_v22 = vadd.f32 %v108_v15, %v97_v14  ;;  %v141_v28 = vadd.f32 %v138_v46, %v129_v21 }
  0x9a   :  { %v112_v32 = vmax.f32 %v110_v22, 0.0 }
  0x9c   :  { %v144_v1 = vpop.permute.xlu0 %143  ;;  %v241_v42 = vperm.slane %v112_v32, 0  ;;  %v254_v63 = vperm.slane %v112_v32, 1 }
  0x9d   :  { %v120_v49 = vpop.permute.xlu1 %119  ;;  %v151_v10 = vmul.f32 %v150_v6, %v144_v1 }
  0x9e   :  { %v170_v52 = vpop.permute.xlu2 %169  ;;  %v128_v5 = vmul.f32 %v127_v3, %v120_v49 }
  0x9f   :  { %v177_v23 = vmul.f32 %v176_v18, %v170_v52 }
  0xa5   :  { %v133_v53 = vpop.permute.xlu1 %132  ;;  %v174_v11 = vpop.permute.xlu0 %173 }
  0xa6   :  { %v140_v7 = vadd.f32 %v133_v53, %v128_v5  ;;  %v178_v45 = vmul.f32 %v176_v18, %v174_v11 }
  0xa7   :  { %v187_v62 = vpop.permute.xlu2 %186 }
  0xa8   :  { %v153_v12 = vadd.f32 %v151_v10, %v140_v7  ;;  %v191_v51 = vmul.f32 %v189_v20, %v187_v62 }
  0xaa   :  { %v166_v19 = vadd.f32 %v164_v16, %v153_v12 }
  0xac   :  { %v179_v27 = vadd.f32 %v177_v23, %v166_v19 }
  0xae   :  { %v148_v61 = vpop.permute.xlu1 %147 }
  0xaf   :  { %v152_v25 = vmul.f32 %v150_v6, %v148_v61  ;;  %v209_v29 = vpop.permute.xlu0 %208 }
  0xb0   :  { %v200_v4 = vpop.permute.xlu2 %199  ;;  %v216_v37 = vmul.f32 %v215_v30, %v209_v29 }
  0xb1   :  { %v154_v36 = vadd.f32 %v152_v25, %v141_v28  ;;  %v204_v53 = vmul.f32 %v202_v26, %v200_v4 }
  0xb7   :  { %v161_v2 = vpop.permute.xlu1 %160 }
  0xb8   :  { %v165_v33 = vmul.f32 %v163_v9, %v161_v2  ;;  %v239_v56 = vpop.permute.xlu0 %238 }
  0xb9   :  { %v222_v17 = vpop.permute.xlu2 %221  ;;  %v243_v61 = vmul.f32 %v241_v42, %v239_v56 }
  0xba   :  { %v167_v41 = vadd.f32 %v165_v33, %v154_v36  ;;  %v229_v43 = vmul.f32 %v228_v38, %v222_v17 }
  0xbc   :  { %v180_v46 = vadd.f32 %v178_v45, %v167_v41 }
  0xbe   :  { %v193_v52 = vadd.f32 %v191_v51, %v180_v46 }
  0xc0   :  { %v183_v13 = vpop.permute.xlu1 %182  ;;  %v206_v55 = vadd.f32 %v204_v53, %v193_v52 }
  0xc1   :  { %v190_v24 = vmul.f32 %v189_v20, %v183_v13  ;;  %v286_v16 = vpop.permute.xlu0 %285 }
  0xc2   :  { %v235_v40 = vpop.permute.xlu2 %234  ;;  %v288_v19 = vperm.slane %v286_v16, 0 }
  0xc3   :  { %v192_v34 = vadd.f32 %v190_v24, %v179_v27  ;;  %v242_v47 = vmul.f32 %v241_v42, %v235_v40 }
  0xc9   :  { %v196_v31 = vpop.permute.xlu1 %195 }
  0xca   :  { %v203_v35 = vmul.f32 %v202_v26, %v196_v31 }
  0xcb   :  { %v252_v60 = vpop.permute.xlu2 %251 }
  0xcc   :  { %v205_v39 = vadd.f32 %v203_v35, %v192_v34  ;;  %v256_v1 = vmul.f32 %v254_v63, %v252_v60 }
  0xce   :  { %v218_v44 = vadd.f32 %v216_v37, %v205_v39 }
  0xd0   :  { %v231_v48 = vadd.f32 %v229_v43, %v218_v44 }
  0xd2   :  { %v213_v49 = vpop.permute.xlu1 %212  ;;  %v244_v50 = vadd.f32 %v242_v47, %v231_v48 }
  0xd3   :  { %v217_v54 = vmul.f32 %v215_v30, %v213_v49 }
  0xd4   :  { %v271_v62 = vpop.permute.xlu2 %270 }
  0xd5   :  { %v219_v58 = vadd.f32 %v217_v54, %v206_v55 }
  0xdb   :  { %v226_v57 = vpop.permute.xlu1 %225 }
  0xdc   :  { %v230_v59 = vmul.f32 %v228_v38, %v226_v57 }
  0xde   :  { %v232_v0 = vadd.f32 %v230_v59, %v219_v58 }
  0xe0   :  { %v245_v2 = vadd.f32 %v243_v61, %v232_v0 }
  0xe2   :  { %v258_v3 = vadd.f32 %v256_v1, %v245_v2 }
  0xe4   :  { %v248_v5 = vpop.permute.xlu1 %247  ;;  %v260_v8 = vmax.f32 %v258_v3, 0.0 }
  0xe5   :  { %v255_v6 = vmul.f32 %v254_v63, %v248_v5 }
  0xe6   :  { %v274_v10 = vmul.f32 %v271_v62, %v260_v8 }
  0xe7   :  { %v257_v7 = vadd.f32 %v255_v6, %v244_v50 }
  0xe9   :  { %v259_v9 = vmax.f32 %v257_v7, 0.0 }
  0xed   :  { %v266_v4 = vpop.permute.xlu1 %265 }
  0xee   :  { %v273_v11 = vmul.f32 %v266_v4, %v259_v9 }
  0xf0   :  { %v275_v12 = vadd.f32 %v274_v10, %v273_v11 }
  0xf2   :  { %v276_v13 = vrot.slane %v275_v12, 4 }
  0xf4   :  { %v277_v14 = vadd.f32 %v276_v13, %v275_v12 }
  0xf6   :  { %v278_v15 = vrot.slane %v277_v14, 2 }
  0xf8   :  { %v279_v17 = vadd.f32 %v278_v15, %v277_v14 }
  0xfa   :  { %v280_v18 = vrot.slane %v279_v17, 1 }
  0xfc   :  { %v281_v20 = vadd.f32 %v280_v18, %v279_v17 }
  0xfe   :  { %v289_v21 = vadd.f32 %v288_v19, %v281_v20 }
 0x100   :  { %290 = vst [vmem:[#allocation3] sm:$0x1] %v289_v21 }
 0x101   :  { %301 = dma.vmem_to_hbm [thread:$0]  %s297_s5, 16, %s299_s22, [#allocation4]  }
 0x102   :  { %374 = dma.done.wait [#allocation4], 16  }
 0x103   :  { %375 = vsyncadd [#allocation4], 4294967280 }
 0x104   :  { %306 = vsyncpa [#allocation4], 1 }

</bundles_post_ra>
